<compile_context>
chip_gen: v7x
topology: tpu7x:2x2x1
jax: 0.10.0
libtpu: 0.0.40
codegen_flags: <defaults>
</compile_context>

<pallas_src>
import math

import jax
import jax.numpy as jnp
from jax.experimental import pallas as pl
from jax.experimental.pallas import tpu as pltpu


def _ffn_kernel(x_ref, w1_ref, b1_ref, w2_ref, b2_ref, o_ref, acc_ref):
    # Grid = (row_tiles, ff_chunks). One step computes the contribution of one
    # d_ff chunk to the output row tile and accumulates it in f32 VMEM scratch.
    k = pl.program_id(1)

    @pl.when(k == 0)
    def _():
        acc_ref[...] = jnp.zeros_like(acc_ref)

    # Linear1 chunk: native-dtype operands on the MXU, f32 accumulation.
    h = jnp.dot(x_ref[...], w1_ref[...], preferred_element_type=jnp.float32)
    h = h + b1_ref[...].astype(jnp.float32)

    # Exact (erf-based) GELU in f32 — matches PyTorch F.gelu default.
    h = 0.5 * h * (1.0 + jax.lax.erf(h * jnp.float32(1.0 / math.sqrt(2.0))))

    # Linear2 partial: cast activation back to weight dtype for full-rate MXU,
    # accumulate the partial product in f32.
    acc_ref[...] += jnp.dot(h.astype(w2_ref.dtype), w2_ref[...],
                            preferred_element_type=jnp.float32)

    @pl.when(k == pl.num_programs(1) - 1)
    def _():
        o_ref[...] = (acc_ref[...] + b2_ref[...].astype(jnp.float32)).astype(o_ref.dtype)


def prepare_ffn_params(w1, b1, w2, b2):
    """One-time (load-time) parameter prep: pre-transpose PyTorch Linear weights.

    w1: [d_ff, d_model] -> W1t [d_model, d_ff];  w2: [d_model, d_ff] -> W2t [d_ff, d_model].
    Hoisted out of the per-call path so no transposed weight copy is materialized
    per forward call.
    """
    return w1.T, b1.reshape(1, -1), w2.T, b2.reshape(1, -1)


def _round_up(x, m):
    return (x + m - 1) // m * m


def position_wise_ffn(x, w1t, b1r, w2t, b2r, *, tile_rows=None, tile_ff=None):
    """x: [B, S, d_model]; w1t: [d_model, d_ff]; b1r: [1, d_ff];
    w2t: [d_ff, d_model]; b2r: [1, d_model]."""
    B, S, d_model = x.shape
    d_ff = w1t.shape[1]
    N = B * S

    sublane = 16 if x.dtype == jnp.bfloat16 else 8

    if tile_rows is None:
        # A real row tile (MXU-aligned on v6e/v7x, modest enough for v5e) so the
        # grid has many steps and DMA pipelines behind compute.
        tile_rows = min(256, _round_up(N, sublane))
    tile_rows = _round_up(tile_rows, sublane)

    if tile_ff is None:
        # Chunk the hidden dim so weight chunks + f32 accumulator stay well
        # under VMEM (64 MiB on v7x); prefer 512 (multiple of 256 for the MXU).
        tile_ff = d_ff
        for cand in (512, 256, 128):
            if d_ff % cand == 0:
                tile_ff = cand
                break
    assert d_ff % tile_ff == 0, "d_ff must be divisible by tile_ff"

    # Pad the token axis so it divides evenly into row tiles (arbitrary B*S ok).
    Np = _round_up(N, tile_rows)
    x2d = x.reshape(N, d_model)
    if Np != N:
        x2d = jnp.pad(x2d, ((0, Np - N), (0, 0)))

    grid = (Np // tile_rows, d_ff // tile_ff)

    def _nbytes(a):
        return a.size * a.dtype.itemsize

    cost = pl.CostEstimate(
        flops=4 * Np * d_model * d_ff,                       # two matmuls
        transcendentals=Np * d_ff,                           # erf per hidden element
        bytes_accessed=(2 * Np * d_model * x.dtype.itemsize  # x in + y out
                        + _nbytes(w1t) + _nbytes(w2t) + _nbytes(b1r) + _nbytes(b2r)),
    )

    out2d = pl.pallas_call(
        _ffn_kernel,
        out_shape=jax.ShapeDtypeStruct((Np, d_model), x.dtype),
        grid_spec=pltpu.PrefetchScalarGridSpec(
            num_scalar_prefetch=0,
            grid=grid,
            in_specs=[
                pl.BlockSpec((tile_rows, d_model), lambda i, k: (i, 0)),  # x tile (resident over k)
                pl.BlockSpec((d_model, tile_ff), lambda i, k: (0, k)),    # W1t chunk
                pl.BlockSpec((1, tile_ff), lambda i, k: (0, k)),          # b1 chunk
                pl.BlockSpec((tile_ff, d_model), lambda i, k: (k, 0)),    # W2t chunk
                pl.BlockSpec((1, d_model), lambda i, k: (0, 0)),          # b2 (constant)
            ],
            out_specs=pl.BlockSpec((tile_rows, d_model), lambda i, k: (i, 0)),
            scratch_shapes=[pltpu.VMEM((tile_rows, d_model), jnp.float32)],
        ),
        compiler_params=pltpu.CompilerParams(
            dimension_semantics=("parallel", "arbitrary"),
            vmem_limit_bytes=48 * 1024 * 1024,   # explicit budget, safe on v7x's 64 MiB
        ),
        cost_estimate=cost,
    )(x2d, w1t, b1r, w2t, b2r)

    return out2d[:N].reshape(B, S, d_model)


def _ref_ffn(x, w1, b1, w2, b2):
    # Pure-JAX reference of the PyTorch forward (gelu, eval-mode dropout = identity)
    h = jnp.einsum("bsd,fd->bsf", x, w1) + b1
    h = 0.5 * h * (1.0 + jax.lax.erf(h / jnp.sqrt(2.0)))
    y = jnp.einsum("bsf,df->bsd", h, w2) + b2
    return y


if __name__ == "__main__":
    key = jax.random.PRNGKey(0)
    # Small but lane-dense shapes: d_model multiple of 128; N=48 exercises row padding.
    batch, seq, d_model, d_ff = 2, 24, 128, 256

    k_x, k_w1, k_b1, k_w2, k_b2 = jax.random.split(key, 5)
    x = jax.random.normal(k_x, (batch, seq, d_model), dtype=jnp.float32)

    # Deterministic param init (mimics nn.Linear uniform(-1/sqrt(fan_in), 1/sqrt(fan_in)))
    lim1 = 1.0 / math.sqrt(d_model)
    lim2 = 1.0 / math.sqrt(d_ff)
    w1 = jax.random.uniform(k_w1, (d_ff, d_model), minval=-lim1, maxval=lim1, dtype=jnp.float32)
    b1 = jax.random.uniform(k_b1, (d_ff,), minval=-lim1, maxval=lim1, dtype=jnp.float32)
    w2 = jax.random.uniform(k_w2, (d_model, d_ff), minval=-lim2, maxval=lim2, dtype=jnp.float32)
    b2 = jax.random.uniform(k_b2, (d_model,), minval=-lim2, maxval=lim2, dtype=jnp.float32)

    # One-time parameter prep (hoisted out of the per-call path).
    w1t, b1r, w2t, b2r = prepare_ffn_params(w1, b1, w2, b2)

    # Small tiles so the test exercises both grid axes (2 row tiles x 2 ff chunks,
    # including the zero-padded last row tile and the k-accumulation path).
    out = position_wise_ffn(x, w1t, b1r, w2t, b2r, tile_rows=32, tile_ff=128)
    out = jax.block_until_ready(out)

    ref = _ref_ffn(x, w1, b1, w2, b2)
    assert out.shape == (batch, seq, d_model)
    assert jnp.allclose(out, ref, atol=1e-5, rtol=1e-5), "mismatch vs reference"

    print("KERNEL_OK")
</pallas_src>

<mosaic_0001>
module attributes {stable_mosaic.version = 11 : i64} {
  func.func @_ffn_kernel(%arg0: i32, %arg1: i32, %arg2: memref<32x128xf32, #tpu.memory_space<vmem>>, %arg3: memref<128x128xf32, #tpu.memory_space<vmem>>, %arg4: memref<1x128xf32, #tpu.memory_space<vmem>>, %arg5: memref<128x128xf32, #tpu.memory_space<vmem>>, %arg6: memref<1x128xf32, #tpu.memory_space<vmem>>, %arg7: memref<32x128xf32, #tpu.memory_space<vmem>>, %arg8: memref<32x128xf32, #tpu.memory_space<vmem>>) attributes {dimension_semantics = [#tpu.dimension_semantics<parallel>, #tpu.dimension_semantics<arbitrary>], iteration_bounds = array<i64: 2, 2>, scalar_prefetch = 0 : i64, scratch_operands = 1 : i64, tpu.core_type = #tpu.core_type<tc>, window_params = [{transform_indices = @transform_0, window_bounds = array<i64: 32, 128>}, {transform_indices = @transform_1, window_bounds = array<i64: 128, 128>}, {transform_indices = @transform_2, window_bounds = array<i64: 1, 128>}, {transform_indices = @transform_3, window_bounds = array<i64: 128, 128>}, {pipeline_mode = #tpu.pipeline_mode<synchronous>, transform_indices = @transform_4, window_bounds = array<i64: 1, 128>}, {transform_indices = @transform_5, window_bounds = array<i64: 32, 128>}]} {
    %c0_i32 = arith.constant 0 : i32
    %0 = arith.cmpi eq, %arg1, %c0_i32 : i32
    %1 = arith.extui %0 : i1 to i32
    %c0_i32_0 = arith.constant 0 : i32
    %2 = arith.cmpi ne, %1, %c0_i32_0 : i32
    scf.if %2 {
      %cst_17 = arith.constant 0.000000e+00 : f32
      %25 = vector.broadcast %cst_17 : f32 to vector<32x128xf32>
      %c0_18 = arith.constant 0 : index
      %c0_19 = arith.constant 0 : index
      %26 = vector.load %arg8[%c0_18, %c0_19] : memref<32x128xf32, #tpu.memory_space<vmem>>, vector<32x128xf32>
      tpu.vector_store %arg8[%c0_18, %c0_19], %25 {strides = array<i32>} : memref<32x128xf32, #tpu.memory_space<vmem>>, vector<32x128xf32>,
    } else {
    }
    %c0 = arith.constant 0 : index
    %c0_1 = arith.constant 0 : index
    %3 = vector.load %arg2[%c0, %c0_1] : memref<32x128xf32, #tpu.memory_space<vmem>>, vector<32x128xf32>
    %c0_2 = arith.constant 0 : index
    %c0_3 = arith.constant 0 : index
    %4 = vector.load %arg3[%c0_2, %c0_3] : memref<128x128xf32, #tpu.memory_space<vmem>>, vector<128x128xf32>
    %cst = arith.constant dense<0.000000e+00> : vector<32x128xf32>
    %5 = tpu.matmul %3, %4, %cst {dimension_numbers = #tpu.dot_dimension_numbers<[1], [0], [0], [1], [0, 0, 1, 1], [], []>} : vector<32x128xf32>, vector<128x128xf32>, vector<32x128xf32> -> vector<32x128xf32>
    %c0_4 = arith.constant 0 : index
    %c0_5 = arith.constant 0 : index
    %6 = vector.load %arg4[%c0_4, %c0_5] : memref<1x128xf32, #tpu.memory_space<vmem>>, vector<1x128xf32>
    %7 = vector.broadcast %6 : vector<1x128xf32> to vector<32x128xf32>
    %8 = arith.addf %5, %7 : vector<32x128xf32>
    %cst_6 = arith.constant 5.000000e-01 : f32
    %9 = vector.broadcast %cst_6 : f32 to vector<32x128xf32>
    %10 = arith.mulf %9, %8 : vector<32x128xf32>
    %cst_7 = arith.constant 0.707106769 : f32
    %11 = vector.broadcast %cst_7 : f32 to vector<32x128xf32>
    %12 = arith.mulf %8, %11 : vector<32x128xf32>
    %13 = math.erf %12 : vector<32x128xf32>
    %cst_8 = arith.constant 1.000000e+00 : f32
    %14 = vector.broadcast %cst_8 : f32 to vector<32x128xf32>
    %15 = arith.addf %14, %13 : vector<32x128xf32>
    %16 = arith.mulf %10, %15 : vector<32x128xf32>
    %c0_9 = arith.constant 0 : index
    %c0_10 = arith.constant 0 : index
    %17 = vector.load %arg8[%c0_9, %c0_10] : memref<32x128xf32, #tpu.memory_space<vmem>>, vector<32x128xf32>
    %c0_11 = arith.constant 0 : index
    %c0_12 = arith.constant 0 : index
    %18 = vector.load %arg5[%c0_11, %c0_12] : memref<128x128xf32, #tpu.memory_space<vmem>>, vector<128x128xf32>
    %cst_13 = arith.constant dense<0.000000e+00> : vector<32x128xf32>
    %19 = tpu.matmul %16, %18, %cst_13 {dimension_numbers = #tpu.dot_dimension_numbers<[1], [0], [0], [1], [0, 0, 1, 1], [], []>} : vector<32x128xf32>, vector<128x128xf32>, vector<32x128xf32> -> vector<32x128xf32>
    %20 = arith.addf %17, %19 : vector<32x128xf32>
    %c0_14 = arith.constant 0 : index
    %c0_15 = arith.constant 0 : index
    %21 = vector.load %arg8[%c0_14, %c0_15] : memref<32x128xf32, #tpu.memory_space<vmem>>, vector<32x128xf32>
    tpu.vector_store %arg8[%c0_14, %c0_15], %20 {strides = array<i32>} : memref<32x128xf32, #tpu.memory_space<vmem>>, vector<32x128xf32>,
    %c1_i32 = arith.constant 1 : i32
    %22 = arith.cmpi eq, %arg1, %c1_i32 : i32
    %23 = arith.extui %22 : i1 to i32
    %c0_i32_16 = arith.constant 0 : i32
    %24 = arith.cmpi ne, %23, %c0_i32_16 : i32
    scf.if %24 {
      %c0_17 = arith.constant 0 : index
      %c0_18 = arith.constant 0 : index
      %25 = vector.load %arg8[%c0_17, %c0_18] : memref<32x128xf32, #tpu.memory_space<vmem>>, vector<32x128xf32>
      %c0_19 = arith.constant 0 : index
      %c0_20 = arith.constant 0 : index
      %26 = vector.load %arg6[%c0_19, %c0_20] : memref<1x128xf32, #tpu.memory_space<vmem>>, vector<1x128xf32>
      %27 = vector.broadcast %26 : vector<1x128xf32> to vector<32x128xf32>
      %28 = arith.addf %25, %27 : vector<32x128xf32>
      %c0_21 = arith.constant 0 : index
      %c0_22 = arith.constant 0 : index
      %29 = vector.load %arg7[%c0_21, %c0_22] : memref<32x128xf32, #tpu.memory_space<vmem>>, vector<32x128xf32>
      tpu.vector_store %arg7[%c0_21, %c0_22], %28 {strides = array<i32>} : memref<32x128xf32, #tpu.memory_space<vmem>>, vector<32x128xf32>,
    } else {
    }
    return
  }
  func.func @transform_0(%arg0: i32, %arg1: i32) -> (i32, i32) {
    %c0_i32 = arith.constant 0 : i32
    %c0_i32_0 = arith.constant 0 : i32
    return %arg0, %c0_i32 : i32, i32
  }
  func.func @transform_1(%arg0: i32, %arg1: i32) -> (i32, i32) {
    %c0_i32 = arith.constant 0 : i32
    %c0_i32_0 = arith.constant 0 : i32
    return %c0_i32, %arg1 : i32, i32
  }
  func.func @transform_2(%arg0: i32, %arg1: i32) -> (i32, i32) {
    %c0_i32 = arith.constant 0 : i32
    %c0_i32_0 = arith.constant 0 : i32
    return %c0_i32, %arg1 : i32, i32
  }
  func.func @transform_3(%arg0: i32, %arg1: i32) -> (i32, i32) {
    %c0_i32 = arith.constant 0 : i32
    %c0_i32_0 = arith.constant 0 : i32
    return %arg1, %c0_i32 : i32, i32
  }
  func.func @transform_4(%arg0: i32, %arg1: i32) -> (i32, i32) {
    %c0_i32 = arith.constant 0 : i32
    %c0_i32_0 = arith.constant 0 : i32
    %c0_i32_1 = arith.constant 0 : i32
    return %c0_i32, %c0_i32_0 : i32, i32
  }
  func.func @transform_5(%arg0: i32, %arg1: i32) -> (i32, i32) {
    %c0_i32 = arith.constant 0 : i32
    %c0_i32_0 = arith.constant 0 : i32
    return %arg0, %c0_i32 : i32, i32
  }
}

</mosaic_0001>

<bundles_post_ra>
// kernel: tpu_custom_call.1
= control target key start
LH: loop header
LB: loop body
LE: loop exit
PB: predicated region body
PF: predicated region fallthrough
CT: control target
= control target key end

     0   :  { %s1792_s0 = inlined_call_operand.hbm [shape: f32[64,128], index: 0, kind: input, shape index: {}]   ;;  %s1793_s1 = inlined_call_operand.hbm [shape: f32[128,256], index: 1, kind: input, shape index: {}]   ;;  %s1794_s2 = inlined_call_operand.vmem [shape: f32[1,256], index: 2, kind: input, shape index: {}]   ;;  %s1795_s3 = inlined_call_operand.hbm [shape: f32[256,128], index: 3, kind: input, shape index: {}]   ;;  %s1796_s4 = inlined_call_operand.vmem [shape: f32[1,128], index: 4, kind: input, shape index: {}]   ;;  %s1797_s5 = inlined_call_operand.hbm [shape: f32[64,128], index: 5, kind: output, shape index: {}]  }
   0x1   :  { %1814 = sst [smem:[#allocation21_spill]] %s1793_s1 }
   0x2   :  { %1815 = sst [smem:[#allocation22_spill]] %s1796_s4 }
   0x3   :  { %1816 = sst [smem:[#allocation23_spill]] %s1797_s5 }
   0x4   :  { %10 = vsyncpa [#allocation4], 0 }
   0x5   :  { %12 = vsyncpa [#allocation4 + $0x1], 0 }
   0x6   :  { %13 = vsyncpa [#allocation7], 0 }
   0x7   :  { %15 = vsyncpa [#allocation7 + $0x1], 0 }
   0x8   :  { %16 = vsyncpa [#allocation5], 0 }
   0x9   :  { %18 = vsyncpa [#allocation5 + $0x1], 0  ;;  %s1367_s18 = smov 0   ;;  %s1369_s19 = smov 0  }
   0xa   :  { %s1371_s20 = smov 0   ;;  %s1373_s21 = smov 0  }
   0xb   :  { %s1375_s22 = smov 0   ;;  %s1377_s23 = smov 0  }
   0xc   :  { %s1379_s24 = smov 0   ;;  %s1381_s25 = smov 0  }
   0xd   :  { %s1383_s26 = smov 0   ;;  %s1385_s27 = smov 0  }
   0xe   :  { %s1387_s28 = smov 0  }
   0xf LB: > { %1817 = sst [smem:[#allocation13_spill]] %s1293_s20  ;;  %s33_s29 = sadd.s32 1, %s1317_s26  ;;  %s1325_s28 = sphi %s1387_s28, %s24_s28   ;;  %s1321_s27 = sphi %s1385_s27, %s1857_s27   ;;  %s1317_s26 = sphi %s1383_s26, %s1863_s26   ;;  %s1313_s25 = sphi %s1381_s25, %s1855_s25   ;;  %s1309_s24 = sphi %s1379_s24, %s1862_s24   ;;  %s1305_s23 = sphi %s1377_s23, %s1854_s23   ;;  %s1301_s22 = sphi %s1375_s22, %s1861_s22   ;;  %s1297_s21 = sphi %s1373_s21, %s1860_s21   ;;  %s1293_s20 = sphi %s1371_s20, %s1852_s20   ;;  %s1289_s19 = sphi %s1369_s19, %s1859_s19   ;;  %s1285_s18 = sphi %s1367_s18, %s1858_s18  }
  0x10   : > { %1818 = sst [smem:[#allocation14_spill]] %s1305_s23  ;;  %p1800_p0 = scmp.eq.s32.totalorder %s1325_s28, 0 }
  0x11   : > { %1819 = sst [smem:[#allocation15_spill]] %s1313_s25  ;;  %p1424_p1 = scmp.ge.s32.totalorder %s33_s29, 2 }
  0x12   : > { %1820 = sst [smem:[#allocation16_spill]] %s1321_s27  ;;  %s69_s6 = sadd.s32 1, %s1293_s20 }
  0x13   : > { %p76_p2 = scmp.ne.s32.totalorder %s1293_s20, %s1289_s19  ;;  %s1865_s29 = smov (%p1424_p1, %s33_s29), 0 }
  0x14   : > { %1822 = sst [smem:[#allocation17_spill]] %s1865_s29  ;;  %s66_s7 = ssub.s32 %s1317_s26, %s1865_s29 }
  0x15   : > { %p78_p4 = por %p76_p2, %p1800_p0  ;;  %p1799_p5 = scmp.lt.s32.totalorder %s1325_s28, 4 }
  0x16   : > { %p67_p6 = scmp.eq.s32.totalorder %s66_s7, 0  ;;  %s229_s8 = sand.u32 1, %s1325_s28  }
  0x17   : > { %s231_s10 = sand.u32 1, %s1293_s20   ;;  %s782_s12 = sshll.u32 %s1317_s26, 7 }
  0x18   : > { %s1444_s9 = scalar_select %p67_p6, %s1293_s20, %s69_s6  }
  0x19   : > { %s1447_s11 = sshll.u32 %s231_s10, 7  ;;  %s1824_s1 = sld [smem:[#allocation21_spill]] }
  0x1a   : > { %1823 = sst [smem:[#allocation18_spill]] %s1444_s9  ;;  %s233_s16 = scalar_lea.vmem [#allocation6], %s1447_s11 }
  0x1b   : > { %s239_s17 = sshll.u32 %s233_s16, 4  ;;  %p1458_p7 = pnand %p1799_p5, %p78_p4  ;;  %s1462_s17 = int_to_ptr.vmem [resolvable:$true] %s239_s17 }
  0x1c   : > { %s1465_s7 = scalar_lea.sflag [#allocation7], %s229_s8 }
  0x1d   : > { %p1803_p10 = pneg %p1458_p7 }
  0x1f   : > { %s1453_s15 = scalar_lea.hbm %s1824_s1, %s782_s12  ;;  %s1114_s14 = scalar_lea.hbm %s1824_s1, 4096 }
  0x20   : > { %s1109_s10 = scalar_lea.hbm %s1453_s15, 2048  ;;  %p1115_p13 = scmp.lt.u32.totalorder %s1453_s15, %s1824_s1 }
  0x21   : > { %p1110_p9 = scmp.ne.s32.totalorder %s1453_s15, %s1109_s10  ;;  %p1116_p2 = scmp.lt.u32.totalorder %s1114_s14, %s1109_s10 }
  0x22   : > { %p1118_p6 = scmp.lt.u32.totalorder %s1109_s10, %s1453_s15 }
  0x23   : > { %p1112_p11 = pnand %p1803_p10, %p1110_p9  ;;  %p1117_p4 = por %p1116_p2, %p1115_p13 }
  0x25   : > { %p1113_p12 = pneg %p1112_p11  ;;  %p1119_p5 = por %p1118_p6, %p1117_p4 }
  0x27   : > { %p1120_p3 = pnand %p1119_p5, %p1113_p12 }
  0x29   : > { %1123 = shalt.err (!%p1120_p3)
}
  0x2a   : > { %s1124_s8 = scalar_lea.vmem %s1462_s17, 2048  ;;  %s1327_s12 = smov [#allocation6]  }
  0x2b   : > { %p1125_p9 = scmp.ne.s32.totalorder %s1462_s17, %s1124_s8  ;;  %s1129_s13 = sshll.u32 %s1327_s12, 4  ;;  %s1130_s13 = int_to_ptr.vmem [resolvable:$false] %s1129_s13 }
  0x2c   : > { %s1131_s29 = scalar_lea.vmem %s1130_s13, 4096  ;;  %p1132_p8 = scmp.lt.s32.totalorder %s1462_s17, %s1130_s13 }
  0x2d   : > { %p1127_p11 = pnand %p1125_p9, %p1803_p10  ;;  %p1133_p13 = scmp.lt.s32.totalorder %s1131_s29, %s1124_s8 }
  0x2f   : > { %p1128_p0 = pneg %p1127_p11  ;;  %p1134_p2 = por %p1133_p13, %p1132_p8 }
  0x31   : > { %p1135_p4 = pnand %p1134_p2, %p1128_p0 }
  0x33   : > { %1138 = shalt.err (!%p1135_p4)
}
  0x34   : > { %s1328_s10 = smov 256   ;;  %s1801_s14 = smov 128  }
  0x35   : > { %s1804_s16 = smov 8   ;;  %p274_p0 = scmp.lt.s32.totalorder %s1325_s28, 5 }
  0x36   : > { %997 = dma.hbm_to_vmem [thread:$0]  (!%p1458_p7), %s1453_s15, 2048, %s1462_s17, %s1465_s7, %s1328_s10, %s1801_s14, %s1804_s16  }
  0x37   : > { %p1826_p3 = scmp.ge.s32.totalorder %s1325_s28, 1  ;;  %s1503_s12 = sadd.s32 4294967295, %s1325_s28  }
  0x38   : > { %s775_s13 = sadd.s32 4294967294, %s1325_s28   ;;  %s36_s29 = sadd.s32 1, %s1321_s27 }
  0x39   : > { %p1498_p5 = pnand %p1826_p3, %p274_p0  ;;  %s43_s1 = sadd.s32 1, %s1305_s23 }
  0x3a   : > { %s1867_s29 = smov (!%p1424_p1, %s36_s29), %s1321_s27  ;;  %p50_p8 = scmp.ne.s32.totalorder %s1305_s23, %s1301_s22 }
  0x3b   : > { %s1827_s8 = scalar_select %p1498_p5, 1, 0 }
  0x3c   : > { %p56_p12 = scmp.ne.s32.totalorder %s1301_s22, %s1297_s21  ;;  %p38_p6 = scmp.ge.s32.totalorder %s1867_s29, 2 }
  0x3d   : > { %p57_p9 = scmp.eq.s32.totalorder %s1503_s12, 0  ;;  %p1828_p11 = scmp.eq.s32.totalorder %s1325_s28, 0 }
  0x3e   : > { %p179_p2 = scmp.eq.s32.totalorder %s1503_s12, 3  ;;  %s1869_s29 = smov (%p38_p6, %s1867_s29), 0 }
  0x3f   : > { %p1518_p13 = por %p1828_p11, %p50_p8  ;;  %1830 = sst [smem:[#allocation19_spill]] %s1869_s29 }
  0x40   : > { %p1528_p1 = por %p57_p9, %p56_p12  ;;  %p1832_p4 = scmp.ne.s32.totalorder %s1289_s19, %s1285_s18 }
  0x41   : > { %s40_s10 = ssub.s32 %s1321_s27, %s1869_s29  ;;  %p1541_p3 = por %p179_p2, %p50_p8 }
  0x42   : > { %s1831_s30 = scalar_select %p1528_p1, 1, 0 }
  0x43   : > { %p1535_p0 = por %p1832_p4, %p57_p9  ;;  %p41_p11 = scmp.eq.s32.totalorder %s40_s10, 0 }
  0x44   : > { %s1834_s14 = scalar_select %p1541_p3, 1, 0 }
  0x45   : > { %s1833_s17 = scalar_select %p1535_p0, 1, 0 }
  0x46   : > { %p185_p10 = scmp.eq.s32.totalorder %s775_s13, 3  ;;  %s208_s16 = sand.u32 1, %s1305_s23  }
  0x47   : > { %s800_s9 = sshll.u32 %s1321_s27, 9  ;;  %s778_s18 = sshll.u32 %s208_s16, 5 }
  0x48   : > { %s1548_s20 = scalar_select %p41_p11, %s1305_s23, %s43_s1  }
  0x49   : > { %p1553_p6 = por %p185_p10, %p56_p12  ;;  %s1560_s29 = scalar_lea.hbm %s1792_s0, %s800_s9 }
  0x4a   : > { %1835 = sst [smem:[#allocation20_spill]] %s1548_s20  ;;  %p1837_p8 = scmp.lt.s32.totalorder %s1325_s28, 4 }
  0x4b   : > { %s1836_s5 = scalar_select %p1553_p6, 1, 0 }
  0x4c   : > { %p1566_p9 = pnand %p1837_p8, %p1518_p13  ;;  %s212_s13 = scalar_lea.vmem [#allocation3], %s778_s18 }
  0x4d   : > { %s219_s10 = sshll.u32 %s212_s13, 4  ;;  %s1572_s27 = scalar_lea.sflag [#allocation4], %s208_s16  ;;  %s1570_s10 = int_to_ptr.vmem [resolvable:$true] %s219_s10 }
  0x4e   : > { %s1139_s4 = scalar_lea.hbm %s1560_s29, 512  ;;  %p1141_p12 = pneg %p1566_p9 }
  0x4f   : > { %p1140_p10 = scmp.ne.s32.totalorder %s1560_s29, %s1139_s4  ;;  %s1144_s15 = scalar_lea.hbm %s1792_s0, 1024 }
  0x50   : > { %p1145_p13 = scmp.lt.u32.totalorder %s1560_s29, %s1792_s0  ;;  %p1146_p11 = scmp.lt.u32.totalorder %s1144_s15, %s1139_s4 }
  0x51   : > { %p1142_p2 = pnand %p1141_p12, %p1140_p10  ;;  %p1148_p6 = scmp.lt.u32.totalorder %s1139_s4, %s1560_s29 }
  0x52   : > { %p1147_p8 = por %p1146_p11, %p1145_p13 }
  0x53   : > { %p1143_p4 = pneg %p1142_p2 }
  0x54   : > { %p1149_p3 = por %p1148_p6, %p1147_p8 }
  0x56   : > { %p1150_p0 = pnand %p1149_p3, %p1143_p4 }
  0x58   : > { %1153 = shalt.err (!%p1150_p0)
}
  0x59   : > { %s1154_s16 = scalar_lea.vmem %s1570_s10, 512  ;;  %s1331_s18 = smov [#allocation3]  }
  0x5a   : > { %p1155_p10 = scmp.ne.s32.totalorder %s1570_s10, %s1154_s16  ;;  %s1159_s13 = sshll.u32 %s1331_s18, 4  ;;  %s1160_s13 = int_to_ptr.vmem [resolvable:$false] %s1159_s13 }
  0x5b   : > { %s1161_s20 = scalar_lea.vmem %s1160_s13, 1024  ;;  %p1162_p5 = scmp.lt.s32.totalorder %s1570_s10, %s1160_s13 }
  0x5c   : > { %p1157_p2 = pnand %p1155_p10, %p1141_p12  ;;  %p1163_p13 = scmp.lt.s32.totalorder %s1161_s20, %s1154_s16 }
  0x5e   : > { %p1158_p1 = pneg %p1157_p2  ;;  %p1164_p11 = por %p1163_p13, %p1162_p5 }
  0x60   : > { %p1165_p6 = pnand %p1164_p11, %p1158_p1 }
  0x62   : > { %1168 = shalt.err (!%p1165_p6)
}
  0x63   : > { %s1839_s23 = smov 8   ;;  %s1840_s4 = smov 128  }
  0x64   : > { %994 = dma.hbm_to_vmem [thread:$0]  (!%p1566_p9), %s1560_s29, 512, %s1570_s10, %s1572_s27, %s1840_s4, %s1840_s4, %s1839_s23  }
  0x65   : > { %s801_s25 = sshll.u32 %s1317_s26, 11  ;;  %s259_s9 = scalar_lea.vmem [#allocation8], %s1447_s11 }
  0x66   : > { %s266_s15 = sshll.u32 %s259_s9, 4  ;;  %s1608_s13 = scalar_lea.hbm %s1795_s3, %s801_s25  ;;  %s1610_s15 = int_to_ptr.vmem [resolvable:$true] %s266_s15 }
  0x67   : > { %s1169_s1 = scalar_lea.hbm %s1608_s13, 2048  ;;  %p1841_p1 = pneg %p1458_p7 }
  0x68   : > { %p1170_p5 = scmp.ne.s32.totalorder %s1608_s13, %s1169_s1  ;;  %s1174_s29 = scalar_lea.hbm %s1795_s3, 4096 }
  0x69   : > { %p1175_p9 = scmp.lt.u32.totalorder %s1608_s13, %s1795_s3  ;;  %p1176_p12 = scmp.lt.u32.totalorder %s1174_s29, %s1169_s1 }
  0x6a   : > { %p1172_p0 = pnand %p1170_p5, %p1841_p1  ;;  %p1178_p8 = scmp.lt.u32.totalorder %s1169_s1, %s1608_s13 }
  0x6b   : > { %p1177_p4 = por %p1176_p12, %p1175_p9 }
  0x6c   : > { %p1173_p3 = pneg %p1172_p0 }
  0x6d   : > { %p1179_p10 = por %p1178_p8, %p1177_p4 }
  0x6f   : > { %p1180_p2 = pnand %p1179_p10, %p1173_p3 }
  0x71   : > { %1183 = shalt.err (!%p1180_p2)
}
  0x72   : > { %s1184_s25 = scalar_lea.vmem %s1610_s15, 2048  ;;  %p1842_p11 = pmov %p1841_p1 }
  0x73   : > { %p1185_p13 = scmp.ne.s32.totalorder %s1610_s15, %s1184_s25  ;;  %s1332_s9 = smov [#allocation8]  }
  0x74   : > { %s1189_s18 = sshll.u32 %s1332_s9, 4  ;;  %s1190_s18 = int_to_ptr.vmem [resolvable:$false] %s1189_s18 }
  0x75   : > { %p1187_p6 = pnand %p1185_p13, %p1842_p11  ;;  %s1191_s16 = scalar_lea.vmem %s1190_s18, 4096 }
  0x76   : > { %p1192_p1 = scmp.lt.s32.totalorder %s1610_s15, %s1190_s18  ;;  %p1193_p0 = scmp.lt.s32.totalorder %s1191_s16, %s1184_s25 }
  0x77   : > { %p1188_p5 = pneg %p1187_p6 }
  0x78   : > { %p1194_p9 = por %p1193_p0, %p1192_p1 }
  0x7a   : > { %p1195_p12 = pnand %p1194_p9, %p1188_p5 }
  0x7c   : > { %1198 = shalt.err (!%p1195_p12)
}
  0x7d   : > { %1000 = dma.hbm_to_vmem [thread:$0]  (!%p1458_p7), %s1608_s13, 2048, %s1610_s15, %s1465_s7, %s1840_s4, %s1840_s4, %s1839_s23  }
  0x7e   : > { %p1843_p3 = scmp.ne.s32.totalorder %s1827_s8, 0 }
  0x7f   : > { %s1642_s1 = sand.u32 (!%p1843_p3), 1, %s1301_s22   ;;  %p1844_p4 = scmp.ne.s32.totalorder (!%p1843_p3), %s1831_s30, 0 }
  0x80   : > { %278 = sbr.rel (%p1843_p3) target bundleno = 677 (0x2a5), region = 40  ;;  %s787_s27 = sshll.u32 (!%p1843_p3), %s1642_s1, 5 }
  0x81   : > { %s281_s11 = scalar_lea.sflag (!%p1843_p3), [#allocation4], %s1642_s1  ;;  %s1646_s29 = scalar_lea.vmem (!%p1843_p3), [#allocation3], %s787_s27 }
  0x87   : > { %1272 = dma.done.wait (%p1844_p4), %s281_s11, 512  }
  0x88   : > { %1274 = vsyncadd (%p1844_p4), %s281_s11, 4294966784  ;;  %s289_s6 = sand.u32 1, %s1503_s12   ;;  %s291_s7 = sand.u32 1, %s1289_s19  }
  0x89   : > { %s788_s8 = sshll.u32 %s291_s7, 7  ;;  %s290_s23 = scalar_lea.sflag [#allocation7], %s289_s6 }
  0x8a   : > { %s1654_s4 = scalar_lea.vmem [#allocation6], %s788_s8  ;;  %p1845_p7 = scmp.ne.s32.totalorder %s1833_s17, 0 }
  0x8c   : > { %1276 = dma.done.wait (%p1845_p7), %s290_s23, 4096  }
  0x8d   : > { %1278 = vsyncadd (%p1845_p7), %s290_s23, 4294963200  ;;  %p343_p8 = scmp.lt.s32.totalorder %s1309_s24, 1  ;;  %s1668_s10 = scalar_lea.vmem [#allocation8], %s788_s8 }
  0x8e   : > { %s1670_s20 = scalar_lea.vmem [#allocation9], %s787_s27  ;;  %p791_p10 = scmp.ne.s32.totalorder %s1309_s24, 0 }
  0x8f   : > { %s1662_s15 = scalar_select %p343_p8, %s1309_s24, 1 }
  0x90   : > { %351 = sbr.rel (%p791_p10) target bundleno = 151 (0x97), region = 56  ;;  %v1333_v0 = vmov (!%p791_p10), 0.0  }
  0x91   : > { %s345_s12 = scalar_lea.vmem %s1794_s2, %s1662_s15  ;;  %352 = vst [vmem:[#allocation2] sm:$0xff] (!%p791_p10), %v1333_v0  ;;  %353 = vst [vmem:[#allocation2 + $0x8] sm:$0xff] (!%p791_p10), %v1333_v0 }
  0x92   : > { %354 = vst [vmem:[#allocation2 + $0x10] sm:$0xff] (!%p791_p10), %v1333_v0  ;;  %355 = vst [vmem:[#allocation2 + $0x18] sm:$0xff] (!%p791_p10), %v1333_v0 }
  0x97 PF: > { %v360_v1 = vld [vmem:[%s1654_s4] sm:$0xff]  ;;  %v361_v2 = vld [vmem:[%s1654_s4 + $0x8] sm:$0xff]  ;;  %v362_v3 = vld [vmem:[%s1654_s4 + $0x10] sm:$0xff]  ;;  %p793_p2 = scmp.ne.s32.totalorder %s1309_s24, 1 }
  0x98   : > { %v919_v4 = vpack.c.bf16 %v361_v2, %v360_v1  ;;  %v363_v5 = vld [vmem:[%s1654_s4 + $0x18] sm:$0xff]  ;;  %v364_v7 = vld [vmem:[%s1654_s4 + $0x20] sm:$0xff]  ;;  %v365_v8 = vld [vmem:[%s1654_s4 + $0x28] sm:$0xff]  ;;  %s1846_s16 = sld [smem:[#allocation22_spill]] (!%p793_p2) }
  0x99   : > { %v923_v6 = vpack.c.bf16 %v363_v5, %v362_v3  ;;  %v927_v9 = vpack.c.bf16 %v365_v8, %v364_v7  ;;  %v356_v10 = vld [vmem:[%s1646_s29] sm:$0xff]  ;;  %v366_v11 = vld [vmem:[%s1654_s4 + $0x30] sm:$0xff]  ;;  %v367_v12 = vld [vmem:[%s1654_s4 + $0x38] sm:$0xff] }
  0x9a   : > { %920 = vmatprep.subr.bf16.mxu0 %v919_v4  ;;  %875 = vmatprep.mubr.f32.mxu0 %v356_v10  ;;  %v492_v13 = vld [vmem:[%s1668_s10] sm:$0xff]  ;;  %v493_v14 = vld [vmem:[%s1668_s10 + $0x8] sm:$0xff]  ;;  %v494_v15 = vld [vmem:[%s1668_s10 + $0x10] sm:$0xff]  ;;  %v931_v19 = vpack.c.bf16 %v367_v12, %v366_v11 }
  0x9b   : > { %922 = vmatpush3.bf16.msra.mxu0 %v919_v4  ;;  %v495_v16 = vld [vmem:[%s1668_s10 + $0x18] sm:$0xff]  ;;  %v951_v17 = vpack.c.bf16 %v493_v14, %v492_v13  ;;  %v496_v20 = vld [vmem:[%s1668_s10 + $0x20] sm:$0xff]  ;;  %v497_v21 = vld [vmem:[%s1668_s10 + $0x28] sm:$0xff] }
  0x9c   : > { %924 = vmatprep.subr.bf16.mxu0 %v923_v6  ;;  %v955_v18 = vpack.c.bf16 %v495_v16, %v494_v15  ;;  %v368_v22 = vld [vmem:[%s1654_s4 + $0x40] sm:$0xff]  ;;  %v369_v23 = vld [vmem:[%s1654_s4 + $0x48] sm:$0xff]  ;;  %v959_v24 = vpack.c.bf16 %v497_v21, %v496_v20  ;;  %v370_v26 = vld [vmem:[%s1654_s4 + $0x50] sm:$0xff] }
  0x9d   : > { %952 = vmatprep.subr.bf16.mxu1 %v951_v17  ;;  %v935_v25 = vpack.c.bf16 %v369_v23, %v368_v22  ;;  %v371_v27 = vld [vmem:[%s1654_s4 + $0x58] sm:$0xff]  ;;  %v372_v29 = vld [vmem:[%s1654_s4 + $0x60] sm:$0xff]  ;;  %v373_v30 = vld [vmem:[%s1654_s4 + $0x68] sm:$0xff] }
  0x9e   : > { %954 = vmatpush3.bf16.msra.mxu1 %v951_v17  ;;  %v939_v28 = vpack.c.bf16 %v371_v27, %v370_v26  ;;  %v943_v31 = vpack.c.bf16 %v373_v30, %v372_v29  ;;  %v374_v32 = vld [vmem:[%s1654_s4 + $0x70] sm:$0xff]  ;;  %v375_v33 = vld [vmem:[%s1654_s4 + $0x78] sm:$0xff]  ;;  %v357_v35 = vld [vmem:[%s1646_s29 + $0x8] sm:$0xff] }
  0x9f   : > { %926 = vmatpush3.bf16.msra.mxu0 %v923_v6  ;;  %956 = vmatprep.subr.bf16.mxu1 %v955_v18  ;;  %v947_v34 = vpack.c.bf16 %v375_v33, %v374_v32  ;;  %v358_v36 = vld [vmem:[%s1646_s29 + $0x10] sm:$0xff]  ;;  %v359_v37 = vld [vmem:[%s1646_s29 + $0x18] sm:$0xff]  ;;  %v500_v41 = vld [vmem:[%s1668_s10 + $0x40] sm:$0xff] }
  0xa0   : > { %928 = vmatprep.subr.bf16.mxu0 %v927_v9  ;;  %v498_v38 = vld [vmem:[%s1668_s10 + $0x30] sm:$0xff]  ;;  %v499_v39 = vld [vmem:[%s1668_s10 + $0x38] sm:$0xff]  ;;  %v501_v42 = vld [vmem:[%s1668_s10 + $0x48] sm:$0xff] }
  0xa1   : > { %v963_v40 = vpack.c.bf16 %v499_v39, %v498_v38  ;;  %v967_v43 = vpack.c.bf16 %v501_v42, %v500_v41  ;;  %v502_v44 = vld [vmem:[%s1668_s10 + $0x50] sm:$0xff]  ;;  %v503_v45 = vld [vmem:[%s1668_s10 + $0x58] sm:$0xff]  ;;  %v504_v47 = vld [vmem:[%s1668_s10 + $0x60] sm:$0xff] }
  0xa2   : > { %958 = vmatpush3.bf16.msra.mxu1 %v955_v18  ;;  %v971_v46 = vpack.c.bf16 %v503_v45, %v502_v44  ;;  %v505_v48 = vld [vmem:[%s1668_s10 + $0x68] sm:$0xff]  ;;  %v506_v50 = vld [vmem:[%s1668_s10 + $0x70] sm:$0xff]  ;;  %v507_v51 = vld [vmem:[%s1668_s10 + $0x78] sm:$0xff] }
  0xa3   : > { %930 = vmatpush3.bf16.msra.mxu0 %v927_v9  ;;  %960 = vmatprep.subr.bf16.mxu1 %v959_v24  ;;  %v975_v49 = vpack.c.bf16 %v505_v48, %v504_v47  ;;  %v979_v52 = vpack.c.bf16 %v507_v51, %v506_v50  ;;  %v792_v53 = vld [vmem:[%s345_s12] ss:$0 sm:$0xff]  ;;  %v489_v18 = vld [vmem:[#allocation2 + $0x8] sm:$0xff] }
  0xa4   : > { %932 = vmatprep.subr.bf16.mxu0 %v931_v19 }
  0xa6   : > { %962 = vmatpush3.bf16.msra.mxu1 %v959_v24  ;;  %v491_v24 = vld [vmem:[#allocation2 + $0x18] sm:$0xff] }
  0xa7   : > { %934 = vmatpush3.bf16.msra.mxu0 %v931_v19  ;;  %964 = vmatprep.subr.bf16.mxu1 %v963_v40  ;;  %v488_v19 = vld [vmem:[#allocation2] sm:$0xff] }
  0xa8   : > { %936 = vmatprep.subr.bf16.mxu0 %v935_v25 }
  0xaa   : > { %966 = vmatpush3.bf16.msra.mxu1 %v963_v40 }
  0xab   : > { %938 = vmatpush3.bf16.msra.mxu0 %v935_v25  ;;  %968 = vmatprep.subr.bf16.mxu1 %v967_v43  ;;  %v490_v25 = vld [vmem:[#allocation2 + $0x10] sm:$0xff] }
  0xac   : > { %940 = vmatprep.subr.bf16.mxu0 %v939_v28 }
  0xae   : > { %970 = vmatpush3.bf16.msra.mxu1 %v967_v43 }
  0xaf   : > { %942 = vmatpush3.bf16.msra.mxu0 %v939_v28  ;;  %972 = vmatprep.subr.bf16.mxu1 %v971_v46 }
  0xb0   : > { %944 = vmatprep.subr.bf16.mxu0 %v943_v31 }
  0xb2   : > { %974 = vmatpush3.bf16.msra.mxu1 %v971_v46 }
  0xb3   : > { %946 = vmatpush3.bf16.msra.mxu0 %v943_v31  ;;  %976 = vmatprep.subr.bf16.mxu1 %v975_v49  ;;  %v794_v31 = vld [vmem:[%s1846_s16] ss:$0 sm:$0xff] (!%p793_p2) }
  0xb4   : > { %948 = vmatprep.subr.bf16.mxu0 %v947_v34 }
  0xb6   : > { %978 = vmatpush3.bf16.msra.mxu1 %v975_v49 }
  0xb7   : > { %950 = vmatpush3.bf16.msra.mxu0 %v947_v34  ;;  %980 = vmatprep.subr.bf16.mxu1 %v979_v52 }
  0xba   : > { %876 = vmatmul.mubr.f32.vlgmr.msra.gmra.mrb[0].mxu0 %v357_v35  ;;  %982 = vmatpush3.bf16.msra.mxu1 %v979_v52 }
  0xbb   : > { %878 = vmatprep.mubr.f32.mxu0 %v358_v36 }
  0xbe   : > { %879 = vmatmul.mubr.f32.gmra.mrb[2].mxu0 %v359_v37 }
 0x18d   : > { %v877_v54 = vpop.f32.mrb[0].mxu0 }
 0x18e   : > { %v455_v55 = vadd.f32 %v877_v54, %v792_v53  ;;  %v449_v56 = vpop.f32.mrb[1].mxu0 }
 0x18f   : > { %v450_v57 = vadd.f32 %v792_v53, %v449_v56 }
 0x190   : > { %v473_v58 = vmul.f32 0.70710677, %v455_v55  ;;  %v469_v7 = vmul.f32 0.5, %v455_v55 }
 0x191   : > { %v472_v59 = vmul.f32 0.70710677, %v450_v57  ;;  %v880_v60 = vpop.f32.mrb[2].mxu0  ;;  %v468_v5 = vmul.f32 0.5, %v450_v57 }
 0x192   : > { %1101 = verf.f32 %v473_v58  ;;  %v465_v61 = vadd.f32 %v880_v60, %v792_v53  ;;  %v459_v62 = vpop.f32.mrb[3].mxu0 }
 0x193   : > { %1103 = verf.f32 %v472_v59  ;;  %v460_v63 = vadd.f32 %v792_v53, %v459_v62 }
 0x194   : > { %v475_v0 = vmul.f32 0.70710677, %v465_v61  ;;  %v471_v15 = vmul.f32 0.5, %v465_v61 }
 0x195   : > { %v474_v1 = vmul.f32 0.70710677, %v460_v63  ;;  %v470_v13 = vmul.f32 0.5, %v460_v63 }
 0x196   : > { %1105 = verf.f32 %v475_v0 }
 0x197   : > { %1107 = verf.f32 %v474_v1 }
 0x19c   : > { %v1102_v2 = vpop.eup %1101 }
 0x19d   : > { %v1104_v3 = vpop.eup %1103  ;;  %v481_v4 = vadd.f32 1.0, %v1102_v2 }
 0x19e   : > { %v480_v6 = vadd.f32 1.0, %v1104_v3 }
 0x19f   : > { %v485_v12 = vmul.f32 %v481_v4, %v469_v7 }
 0x1a0   : > { %v1106_v8 = vpop.eup %1105  ;;  %v484_v9 = vmul.f32 %v480_v6, %v468_v5 }
 0x1a1   : > { %v1108_v10 = vpop.eup %1107  ;;  %v483_v11 = vadd.f32 1.0, %v1106_v8 }
 0x1a2   : > { %v482_v14 = vadd.f32 1.0, %v1108_v10  ;;  %913 = vmatprep.mubr.f32.mxu1 %v484_v9 }
 0x1a3   : > { %914 = vmatmul.mubr.f32.vlgmr.msra.gmra.mrb[0].mxu1 %v485_v12  ;;  %v487_v17 = vmul.f32 %v483_v11, %v471_v15 }
 0x1a4   : > { %v486_v16 = vmul.f32 %v482_v14, %v470_v13 }
 0x1a6   : > { %916 = vmatprep.mubr.f32.mxu1 %v486_v16 }
 0x1a7   : > { %917 = vmatmul.mubr.f32.gmra.mrb[2].mxu1 %v487_v17 }
 0x276   : > { %v915_v20 = vpop.f32.mrb[0].mxu1 }
 0x277   : > { %v594_v21 = vadd.f32 %v915_v20, %v489_v18  ;;  %v574_v22 = vpop.f32.mrb[1].mxu1 }
 0x278   : > { %v593_v23 = vadd.f32 %v574_v22, %v488_v19  ;;  %604 = sbr.rel (%p793_p2) target bundleno = 649 (0x289), region = 60 }
 0x279   : > { %598 = vst [vmem:[#allocation2 + $0x8] sm:$0xff] %v594_v21 }
 0x27a   : > { %597 = vst [vmem:[#allocation2] sm:$0xff] %v593_v23  ;;  %v918_v26 = vpop.f32.mrb[2].mxu1 }
 0x27b   : > { %v596_v27 = vadd.f32 %v918_v26, %v491_v24  ;;  %v584_v28 = vpop.f32.mrb[3].mxu1 }
 0x27c   : > { %v595_v29 = vadd.f32 %v584_v28, %v490_v25 }
 0x27d   : > { %600 = vst [vmem:[#allocation2 + $0x18] sm:$0xff] %v596_v27 }
 0x27e   : > { %599 = vst [vmem:[#allocation2 + $0x10] sm:$0xff] %v595_v29 }
 0x280   : > { %v606_v32 = vld [vmem:[#allocation2 + $0x8] sm:$0xff] }
 0x281   : > { %v605_v30 = vld [vmem:[#allocation2] sm:$0xff]  ;;  %v617_v34 = vadd.f32 %v794_v31, %v606_v32 }
 0x282   : > { %v616_v33 = vadd.f32 %v794_v31, %v605_v30 }
 0x283   : > { %621 = vst [vmem:[%s1670_s20 + $0x8] sm:$0xff] %v617_v34 }
 0x284   : > { %v608_v36 = vld [vmem:[#allocation2 + $0x18] sm:$0xff]  ;;  %620 = vst [vmem:[%s1670_s20] sm:$0xff] %v616_v33 }
 0x285   : > { %v607_v35 = vld [vmem:[#allocation2 + $0x10] sm:$0xff]  ;;  %v619_v38 = vadd.f32 %v794_v31, %v608_v36 }
 0x286   : > { %v618_v37 = vadd.f32 %v794_v31, %v607_v35 }
 0x287   : > { %623 = vst [vmem:[%s1670_s20 + $0x18] sm:$0xff] %v619_v38 }
 0x288   : > { %622 = vst [vmem:[%s1670_s20 + $0x10] sm:$0xff] %v618_v37 }
 0x289 PF: > { %s1847_s24 = sld [smem:[#allocation15_spill]]  ;;  %s638_s8 = sshll.u32 %s1670_s20, 4  ;;  %s1729_s8 = int_to_ptr.vmem [resolvable:$true] %s638_s8 }
 0x28a   : > { %s1848_s6 = sld [smem:[#allocation23_spill]]  ;;  %s625_s23 = scalar_lea.sflag [#allocation5], %s1642_s1 }
 0x28b   : > { %s1199_s4 = scalar_lea.vmem %s1729_s8, 512  ;;  %p1849_p11 = scmp.ne.s32.totalorder %s1834_s14, 0 }
 0x28c   : > { %p1200_p13 = scmp.ne.s32.totalorder %s1729_s8, %s1199_s4  ;;  %s1334_s15 = smov [#allocation9]  }
 0x28d   : > { %s1203_s30 = sshll.u32 %s1334_s15, 4  ;;  %s1204_s30 = int_to_ptr.vmem [resolvable:$false] %s1203_s30 }
 0x28e   : > { %p1201_p6 = pnand %p1200_p13, %p1849_p11  ;;  %s1205_s13 = scalar_lea.vmem %s1204_s30, 1024 }
 0x28f   : > { %s802_s27 = sshll.u32 %s1847_s24, 9  ;;  %p1206_p1 = scmp.lt.s32.totalorder %s1729_s8, %s1204_s30 }
 0x290   : > { %s1726_s7 = scalar_lea.hbm %s1848_s6, %s802_s27  ;;  %p1202_p5 = pneg %p1201_p6 }
 0x291   : > { %p1207_p0 = scmp.lt.s32.totalorder %s1205_s13, %s1199_s4 }
 0x293   : > { %p1208_p9 = por %p1207_p0, %p1206_p1 }
 0x295   : > { %p1209_p12 = pnand %p1208_p9, %p1202_p5 }
 0x297   : > { %1212 = shalt.err (!%p1209_p12)
}
 0x298   : > { %s1213_s12 = scalar_lea.hbm %s1726_s7, 512  ;;  %s1217_s17 = scalar_lea.hbm %s1848_s6, 1024 }
 0x299   : > { %p1214_p3 = scmp.ne.s32.totalorder %s1726_s7, %s1213_s12  ;;  %p1218_p8 = scmp.lt.u32.totalorder %s1726_s7, %s1848_s6 }
 0x29a   : > { %p1219_p10 = scmp.lt.u32.totalorder %s1217_s17, %s1213_s12  ;;  %p1221_p13 = scmp.lt.u32.totalorder %s1213_s12, %s1726_s7 }
 0x29b   : > { %p1215_p4 = pnand %p1214_p3, %p1849_p11 }
 0x29c   : > { %p1220_p2 = por %p1219_p10, %p1218_p8 }
 0x29d   : > { %p1216_p7 = pneg %p1215_p4 }
 0x29e   : > { %p1222_p6 = por %p1221_p13, %p1220_p2 }
 0x2a0   : > { %p1223_p5 = pnand %p1222_p6, %p1216_p7 }
 0x2a2   : > { %1226 = shalt.err (!%p1223_p5)
}
 0x2a3   : > { %s1335_s18 = smov 128   ;;  %s1336_s16 = smov 8  }
 0x2a4   : > { %989 = dma.vmem_to_hbm [thread:$0]  (%p1849_p11), %s1729_s8, 512, %s1726_s7, %s625_s23, %s1335_s18, %s1335_s18, %s1336_s16  }
 0x2a5 PF: > { %p1006_p1 = scmp.ge.s32.totalorder %s1325_s28, 2  ;;  %s653_s24 = sand.u32 1, %s1297_s21  }
 0x2a6   : > { %p1850_p0 = scmp.ne.s32.totalorder %s1836_s5, 0  ;;  %s654_s27 = scalar_lea.sflag [#allocation5], %s653_s24 }
 0x2a8   : > { %p1002_p9 = pnand %p1006_p1, %p1850_p0 }
 0x2aa   : > { %1280 = dma.done.wait (!%p1002_p9), %s654_s27, 512  }
 0x2ab   : > { %1282 = vsyncadd (!%p1002_p9), %s654_s27, 4294966784  ;;  %s24_s28 = sadd.s32 1, %s1325_s28   ;;  %s1851_s11 = sld [smem:[#allocation13_spill]] }
 0x2ac   : > { %p21_p12 = scmp.ge.s32.totalorder %s24_s28, 6   ;;  %s1852_s20 = sld [smem:[#allocation18_spill]] }
 0x2ad   : > { %s1853_s14 = sld [smem:[#allocation14_spill]]  ;;  %s1854_s23 = sld [smem:[#allocation20_spill]] }
 0x2ae   : > { %s1855_s25 = sld [smem:[#allocation16_spill]]  ;;  %s1856_s1 = sld [smem:[#allocation17_spill]] }
 0x2af   : > { %s1857_s27 = sld [smem:[#allocation19_spill]]  ;;  %s1858_s18 = smov %s1289_s19 }
 0x2b0   : > { %s1860_s21 = smov %s1301_s22  ;;  %s1862_s24 = smov %s1317_s26 }
 0x2b1   : > { %s1859_s19 = smov %s1851_s11  ;;  %23 = sbr.rel (!%p21_p12) target bundleno = 15 (0xf), region = 120 }
 0x2b3   : > { %s1861_s22 = smov %s1853_s14 }
 0x2b4   : > { %s1863_s26 = smov %s1856_s1 }
 0x2b8   :  { %659 = vsyncpa [#allocation4], 1 }
 0x2b9   :  { %661 = vsyncpa [#allocation4 + $0x1], 1 }
 0x2ba   :  { %662 = vsyncpa [#allocation7], 1 }
 0x2bb   :  { %664 = vsyncpa [#allocation7 + $0x1], 1 }
 0x2bc   :  { %665 = vsyncpa [#allocation5], 1 }
 0x2bd   :  { %667 = vsyncpa [#allocation5 + $0x1], 1 }

</bundles_post_ra>
